<compile_context>
chip_gen: v7x
topology: tpu7x:2x2x1
jax: 0.10.0
libtpu: 0.0.40
codegen_flags: <defaults>
</compile_context>

<pallas_src>
import jax
import jax.numpy as jnp
from jax.experimental import pallas as pl
from jax.experimental.pallas import tpu as pltpu


def _mlp_kernel(x_ref, w1_ref, b1_ref, w2_ref, b2_ref, w3_ref, b3_ref, o_ref):
    # x_ref : (B, Din)        w1_ref : (Din, 16)   b1_ref : (1, 16)
    # w2_ref: (16, 16)        b2_ref : (1, 16)
    # w3_ref: (16, Dout)      b3_ref : (1, Dout)   o_ref  : (B, Dout)
    x = x_ref[...]

    h1 = jnp.dot(x, w1_ref[...], preferred_element_type=jnp.float32) + b1_ref[...]
    h1 = jnp.maximum(h1, 0.0)                       # ReLU (VPU)

    h2 = jnp.dot(h1, w2_ref[...], preferred_element_type=jnp.float32) + b2_ref[...]
    h2 = jnp.maximum(h2, 0.0)                       # ReLU (VPU)

    out = jnp.dot(h2, w3_ref[...], preferred_element_type=jnp.float32) + b3_ref[...]
    o_ref[...] = out.astype(o_ref.dtype)


def neural_network_forward(x, w1, b1, w2, b2, w3, b3):
    """Forward pass matching the PyTorch module.

    x  : (B, ...)        -> flattened to (B, input_size)
    w1 : (16, input_size)   b1 : (16,)
    w2 : (16, 16)           b2 : (16,)
    w3 : (output_size, 16)  b3 : (output_size,)
    Returns logits of shape (B, output_size).
    """
    B = x.shape[0]
    x_flat = x.reshape(B, -1).astype(jnp.float32)          # nn.Flatten()
    d_out = w3.shape[0]

    # Pre-transpose weights once (outside the kernel); biases as (1, N) rows.
    w1_t = jnp.transpose(w1).astype(jnp.float32)            # (Din, 16)
    w2_t = jnp.transpose(w2).astype(jnp.float32)            # (16, 16)
    w3_t = jnp.transpose(w3).astype(jnp.float32)            # (16, Dout)
    b1_r = b1.reshape(1, -1).astype(jnp.float32)
    b2_r = b2.reshape(1, -1).astype(jnp.float32)
    b3_r = b3.reshape(1, -1).astype(jnp.float32)

    vmem = lambda: pl.BlockSpec(memory_space=pltpu.MemorySpace.VMEM)

    return pl.pallas_call(
        _mlp_kernel,
        out_shape=jax.ShapeDtypeStruct((B, d_out), jnp.float32),
        in_specs=[vmem() for _ in range(7)],   # whole arrays resident in VMEM, no grid
        out_specs=vmem(),
    )(x_flat, w1_t, b1_r, w2_t, b2_r, w3_t, b3_r)


def _mlp_reference(x, w1, b1, w2, b2, w3, b3):
    """Pure-JAX reference matching the PyTorch NeuralNetwork.forward."""
    B = x.shape[0]
    xf = x.reshape(B, -1).astype(jnp.float32)
    h1 = jnp.maximum(xf @ w1.T + b1, 0.0)
    h2 = jnp.maximum(h1 @ w2.T + b2, 0.0)
    return h2 @ w3.T + b3


if __name__ == "__main__":
    # Small deterministic example: x of shape (2, 4, 16, 16) -> input_size = 1024,
    # hidden = 16 (fixed by the module), output_size = 10.
    B, C, Hs, Ws = 2, 4, 16, 16
    input_size = C * Hs * Ws
    hidden = 16
    output_size = 10

    key = jax.random.PRNGKey(0)
    kx, k1, k2, k3, k4, k5, k6 = jax.random.split(key, 7)

    x = jax.random.normal(kx, (B, C, Hs, Ws), dtype=jnp.float32)

    # torch.nn.Linear default init: U(-1/sqrt(fan_in), 1/sqrt(fan_in))
    bnd1 = 1.0 / jnp.sqrt(jnp.float32(input_size))
    bnd2 = 1.0 / jnp.sqrt(jnp.float32(hidden))
    w1 = jax.random.uniform(k1, (hidden, input_size), jnp.float32, -bnd1, bnd1)
    b1 = jax.random.uniform(k2, (hidden,), jnp.float32, -bnd1, bnd1)
    w2 = jax.random.uniform(k3, (hidden, hidden), jnp.float32, -bnd2, bnd2)
    b2 = jax.random.uniform(k4, (hidden,), jnp.float32, -bnd2, bnd2)
    w3 = jax.random.uniform(k5, (output_size, hidden), jnp.float32, -bnd2, bnd2)
    b3 = jax.random.uniform(k6, (output_size,), jnp.float32, -bnd2, bnd2)

    y = neural_network_forward(x, w1, b1, w2, b2, w3, b3)
    y = jax.block_until_ready(y)

    y_ref = jax.block_until_ready(_mlp_reference(x, w1, b1, w2, b2, w3, b3))

    assert y.shape == (B, output_size)
    assert jnp.allclose(y, y_ref, atol=1e-5, rtol=1e-5), "mismatch vs reference"

    print("KERNEL_OK")
</pallas_src>

<mosaic_0001>
module attributes {stable_mosaic.version = 11 : i64} {
  func.func @_mlp_kernel(%arg0: memref<2x1024xf32, #tpu.memory_space<vmem>>, %arg1: memref<1024x16xf32, #tpu.memory_space<vmem>>, %arg2: memref<1x16xf32, #tpu.memory_space<vmem>>, %arg3: memref<16x16xf32, #tpu.memory_space<vmem>>, %arg4: memref<1x16xf32, #tpu.memory_space<vmem>>, %arg5: memref<16x10xf32, #tpu.memory_space<vmem>>, %arg6: memref<1x10xf32, #tpu.memory_space<vmem>>, %arg7: memref<2x10xf32, #tpu.memory_space<vmem>>) attributes {dimension_semantics = [], scalar_prefetch = 0 : i64, scratch_operands = 0 : i64, tpu.core_type = #tpu.core_type<tc>} {
    %c0 = arith.constant 0 : index
    %c0_0 = arith.constant 0 : index
    %0 = vector.load %arg0[%c0, %c0_0] : memref<2x1024xf32, #tpu.memory_space<vmem>>, vector<2x1024xf32>
    %c0_1 = arith.constant 0 : index
    %c0_2 = arith.constant 0 : index
    %1 = vector.load %arg1[%c0_1, %c0_2] : memref<1024x16xf32, #tpu.memory_space<vmem>>, vector<1024x16xf32>
    %cst = arith.constant dense<0.000000e+00> : vector<2x16xf32>
    %2 = tpu.matmul %0, %1, %cst {dimension_numbers = #tpu.dot_dimension_numbers<[1], [0], [0], [1], [0, 0, 1, 1], [], []>} : vector<2x1024xf32>, vector<1024x16xf32>, vector<2x16xf32> -> vector<2x16xf32>
    %c0_3 = arith.constant 0 : index
    %c0_4 = arith.constant 0 : index
    %3 = vector.load %arg2[%c0_3, %c0_4] : memref<1x16xf32, #tpu.memory_space<vmem>>, vector<1x16xf32>
    %4 = vector.broadcast %3 : vector<1x16xf32> to vector<2x16xf32>
    %5 = arith.addf %2, %4 : vector<2x16xf32>
    %cst_5 = arith.constant 0.000000e+00 : f32
    %6 = vector.broadcast %cst_5 : f32 to vector<2x16xf32>
    %7 = arith.maximumf %5, %6 : vector<2x16xf32>
    %c0_6 = arith.constant 0 : index
    %c0_7 = arith.constant 0 : index
    %8 = vector.load %arg3[%c0_6, %c0_7] : memref<16x16xf32, #tpu.memory_space<vmem>>, vector<16x16xf32>
    %cst_8 = arith.constant dense<0.000000e+00> : vector<2x16xf32>
    %9 = tpu.matmul %7, %8, %cst_8 {dimension_numbers = #tpu.dot_dimension_numbers<[1], [0], [0], [1], [0, 0, 1, 1], [], []>} : vector<2x16xf32>, vector<16x16xf32>, vector<2x16xf32> -> vector<2x16xf32>
    %c0_9 = arith.constant 0 : index
    %c0_10 = arith.constant 0 : index
    %10 = vector.load %arg4[%c0_9, %c0_10] : memref<1x16xf32, #tpu.memory_space<vmem>>, vector<1x16xf32>
    %11 = vector.broadcast %10 : vector<1x16xf32> to vector<2x16xf32>
    %12 = arith.addf %9, %11 : vector<2x16xf32>
    %cst_11 = arith.constant 0.000000e+00 : f32
    %13 = vector.broadcast %cst_11 : f32 to vector<2x16xf32>
    %14 = arith.maximumf %12, %13 : vector<2x16xf32>
    %c0_12 = arith.constant 0 : index
    %c0_13 = arith.constant 0 : index
    %15 = vector.load %arg5[%c0_12, %c0_13] : memref<16x10xf32, #tpu.memory_space<vmem>>, vector<16x10xf32>
    %cst_14 = arith.constant dense<0.000000e+00> : vector<2x10xf32>
    %16 = tpu.matmul %14, %15, %cst_14 {dimension_numbers = #tpu.dot_dimension_numbers<[1], [0], [0], [1], [0, 0, 1, 1], [], []>} : vector<2x16xf32>, vector<16x10xf32>, vector<2x10xf32> -> vector<2x10xf32>
    %c0_15 = arith.constant 0 : index
    %c0_16 = arith.constant 0 : index
    %17 = vector.load %arg6[%c0_15, %c0_16] : memref<1x10xf32, #tpu.memory_space<vmem>>, vector<1x10xf32>
    %18 = vector.broadcast %17 : vector<1x10xf32> to vector<2x10xf32>
    %19 = arith.addf %16, %18 : vector<2x10xf32>
    %c0_17 = arith.constant 0 : index
    %c0_18 = arith.constant 0 : index
    %20 = vector.load %arg7[%c0_17, %c0_18] : memref<2x10xf32, #tpu.memory_space<vmem>>, vector<2x10xf32>
    tpu.vector_store %arg7[%c0_17, %c0_18], %19 {strides = array<i32>} : memref<2x10xf32, #tpu.memory_space<vmem>>, vector<2x10xf32>,
    return
  }
}

</mosaic_0001>

<bundles_post_ra>
// kernel: tpu_custom_call.1
= control target key start
LH: loop header
LB: loop body
LE: loop exit
PB: predicated region body
PF: predicated region fallthrough
CT: control target
= control target key end

     0   :  { %v1001_v47 = vmov 1983009808   ;;  %v170_v49 = vlaneseq  ;;  %s1480_s0 = inlined_call_operand.vmem [shape: f32[2,1024], index: 0, kind: input, shape index: {}]   ;;  %s1481_s1 = inlined_call_operand.vmem [shape: f32[1024,16], index: 1, kind: input, shape index: {}]   ;;  %s1482_s2 = inlined_call_operand.vmem [shape: f32[1,16], index: 2, kind: input, shape index: {}]   ;;  %s1483_s3 = inlined_call_operand.vmem [shape: f32[16,16], index: 3, kind: input, shape index: {}]   ;;  %s1484_s4 = inlined_call_operand.vmem [shape: f32[1,16], index: 4, kind: input, shape index: {}]   ;;  %s1485_s5 = inlined_call_operand.vmem [shape: f32[16,10], index: 5, kind: input, shape index: {}]   ;;  %s1486_s6 = inlined_call_operand.vmem [shape: f32[1,10], index: 6, kind: input, shape index: {}]   ;;  %s1487_s7 = inlined_call_operand.hbm [shape: f32[2,10], index: 7, kind: output, shape index: {}]  }
   0x1   :  { %v45_v0 = vld [vmem:[%s1481_s1 + $0x80] sm:$0xff]  ;;  %v46_v1 = vld [vmem:[%s1481_s1 + $0x88] sm:$0xff]  ;;  %v47_v11 = vld [vmem:[%s1481_s1 + $0x90] sm:$0xff]  ;;  %v168_v48 = vunpack.c.l.s4 %v1001_v47 }
   0x2   :  { %v29_v2 = vld [vmem:[%s1481_s1] sm:$0xff]  ;;  %v836_v3 = vpack.c.bf16 %v46_v1, %v45_v0  ;;  %v30_v4 = vld [vmem:[%s1481_s1 + $0x8] sm:$0xff]  ;;  %v48_v13 = vld [vmem:[%s1481_s1 + $0x98] sm:$0xff]  ;;  %v171_v0 = vshrl.u32 %v170_v49, 7 }
   0x3   :  { %v77_v5 = vld [vmem:[%s1481_s1 + $0x180] sm:$0xff]  ;;  %v78_v6 = vld [vmem:[%s1481_s1 + $0x188] sm:$0xff]  ;;  %v838_v7 = vpack.c.bf16 %v30_v4, %v29_v2  ;;  %v31_v14 = vld [vmem:[%s1481_s1 + $0x10] sm:$0xff]  ;;  %v840_v16 = vpack.c.bf16 %v48_v13, %v47_v11  ;;  %v169_v63 = vunpack.c.0.s8 %v168_v48 }
   0x4   :  { %v868_v8 = vpack.c.bf16 %v78_v6, %v77_v5  ;;  %v61_v9 = vld [vmem:[%s1481_s1 + $0x100] sm:$0xff]  ;;  %v62_v10 = vld [vmem:[%s1481_s1 + $0x108] sm:$0xff]  ;;  %837 = vmatprep.subr.bf16.mxu0 %v836_v3  ;;  %v32_v15 = vld [vmem:[%s1481_s1 + $0x18] sm:$0xff] }
   0x5   :  { %v870_v12 = vpack.c.bf16 %v62_v10, %v61_v9  ;;  %839 = vmatpush3.bf16.msra.mxu0 %v838_v7  ;;  %v842_v17 = vpack.c.bf16 %v32_v15, %v31_v14  ;;  %v79_v18 = vld [vmem:[%s1481_s1 + $0x190] sm:$0xff]  ;;  %v80_v19 = vld [vmem:[%s1481_s1 + $0x198] sm:$0xff]  ;;  %v49_v23 = vld [vmem:[%s1481_s1 + $0xa0] sm:$0xff]  ;;  %v1196_v13 = vsub.s32 %v169_v63, %v171_v0 }
   0x6   :  { %869 = vmatprep.subr.bf16.mxu1 %v868_v8  ;;  %v63_v20 = vld [vmem:[%s1481_s1 + $0x110] sm:$0xff]  ;;  %v872_v21 = vpack.c.bf16 %v80_v19, %v79_v18  ;;  %v64_v22 = vld [vmem:[%s1481_s1 + $0x118] sm:$0xff]  ;;  %v50_v24 = vld [vmem:[%s1481_s1 + $0xa8] sm:$0xff]  ;;  %841 = vmatprep.subr.bf16.mxu0 %v840_v16 }
   0x7   :  { %871 = vmatpush3.bf16.msra.mxu1 %v870_v12  ;;  %v874_v25 = vpack.c.bf16 %v64_v22, %v63_v20  ;;  %v844_v26 = vpack.c.bf16 %v50_v24, %v49_v23  ;;  %v33_v27 = vld [vmem:[%s1481_s1 + $0x20] sm:$0xff]  ;;  %v34_v28 = vld [vmem:[%s1481_s1 + $0x28] sm:$0xff]  ;;  %v51_v35 = vld [vmem:[%s1481_s1 + $0xb0] sm:$0xff] }
   0x8   :  { %v81_v29 = vld [vmem:[%s1481_s1 + $0x1a0] sm:$0xff]  ;;  %873 = vmatprep.subr.bf16.mxu1 %v872_v21  ;;  %v82_v30 = vld [vmem:[%s1481_s1 + $0x1a8] sm:$0xff]  ;;  %v846_v33 = vpack.c.bf16 %v34_v28, %v33_v27  ;;  %v52_v36 = vld [vmem:[%s1481_s1 + $0xb8] sm:$0xff] }
   0x9   :  { %v65_v31 = vld [vmem:[%s1481_s1 + $0x120] sm:$0xff]  ;;  %v66_v32 = vld [vmem:[%s1481_s1 + $0x128] sm:$0xff]  ;;  %843 = vmatpush3.bf16.msra.mxu0 %v842_v17  ;;  %v876_v34 = vpack.c.bf16 %v82_v30, %v81_v29  ;;  %v35_v37 = vld [vmem:[%s1481_s1 + $0x30] sm:$0xff]  ;;  %v848_v39 = vpack.c.bf16 %v52_v36, %v51_v35 }
   0xa   :  { %845 = vmatprep.subr.bf16.mxu0 %v844_v26  ;;  %v878_v38 = vpack.c.bf16 %v66_v32, %v65_v31  ;;  %v36_v40 = vld [vmem:[%s1481_s1 + $0x38] sm:$0xff]  ;;  %v83_v41 = vld [vmem:[%s1481_s1 + $0x1b0] sm:$0xff]  ;;  %v53_v46 = vld [vmem:[%s1481_s1 + $0xc0] sm:$0xff] }
   0xb   :  { %875 = vmatpush3.bf16.msra.mxu1 %v874_v25  ;;  %v84_v42 = vld [vmem:[%s1481_s1 + $0x1b8] sm:$0xff]  ;;  %v67_v44 = vld [vmem:[%s1481_s1 + $0x130] sm:$0xff]  ;;  %v54_v50 = vld [vmem:[%s1481_s1 + $0xc8] sm:$0xff]  ;;  %v850_v51 = vpack.c.bf16 %v36_v40, %v35_v37 }
   0xc   :  { %877 = vmatprep.subr.bf16.mxu1 %v876_v34  ;;  %v880_v43 = vpack.c.bf16 %v84_v42, %v83_v41  ;;  %v68_v45 = vld [vmem:[%s1481_s1 + $0x138] sm:$0xff]  ;;  %v85_v52 = vld [vmem:[%s1481_s1 + $0x1c0] sm:$0xff]  ;;  %v86_v53 = vld [vmem:[%s1481_s1 + $0x1c8] sm:$0xff]  ;;  %v852_v55 = vpack.c.bf16 %v54_v50, %v53_v46 }
   0xd   :  { %847 = vmatpush3.bf16.msra.mxu0 %v846_v33  ;;  %v882_v54 = vpack.c.bf16 %v68_v45, %v67_v44  ;;  %v37_v56 = vld [vmem:[%s1481_s1 + $0x40] sm:$0xff]  ;;  %v38_v57 = vld [vmem:[%s1481_s1 + $0x48] sm:$0xff]  ;;  %v884_v59 = vpack.c.bf16 %v86_v53, %v85_v52  ;;  %v55_v61 = vld [vmem:[%s1481_s1 + $0xd0] sm:$0xff] }
   0xe   :  { %849 = vmatprep.subr.bf16.mxu0 %v848_v39  ;;  %v69_v58 = vld [vmem:[%s1481_s1 + $0x140] sm:$0xff]  ;;  %v70_v60 = vld [vmem:[%s1481_s1 + $0x148] sm:$0xff]  ;;  %v56_v62 = vld [vmem:[%s1481_s1 + $0xd8] sm:$0xff]  ;;  %v854_v3 = vpack.c.bf16 %v38_v57, %v37_v56 }
   0xf   :  { %879 = vmatpush3.bf16.msra.mxu1 %v878_v38  ;;  %v87_v1 = vld [vmem:[%s1481_s1 + $0x1d0] sm:$0xff]  ;;  %v88_v2 = vld [vmem:[%s1481_s1 + $0x1d8] sm:$0xff]  ;;  %v886_v4 = vpack.c.bf16 %v70_v60, %v69_v58  ;;  %v856_v5 = vpack.c.bf16 %v56_v62, %v55_v61  ;;  %v57_v11 = vld [vmem:[%s1481_s1 + $0xe0] sm:$0xff] }
  0x10   :  { %881 = vmatprep.subr.bf16.mxu1 %v880_v43  ;;  %v39_v6 = vld [vmem:[%s1481_s1 + $0x50] sm:$0xff]  ;;  %v40_v7 = vld [vmem:[%s1481_s1 + $0x58] sm:$0xff]  ;;  %v888_v9 = vpack.c.bf16 %v88_v2, %v87_v1  ;;  %v58_v12 = vld [vmem:[%s1481_s1 + $0xe8] sm:$0xff] }
  0x11   :  { %851 = vmatpush3.bf16.msra.mxu0 %v850_v51  ;;  %v71_v8 = vld [vmem:[%s1481_s1 + $0x150] sm:$0xff]  ;;  %v72_v10 = vld [vmem:[%s1481_s1 + $0x158] sm:$0xff]  ;;  %v89_v14 = vld [vmem:[%s1481_s1 + $0x1e0] sm:$0xff]  ;;  %v858_v16 = vpack.c.bf16 %v40_v7, %v39_v6  ;;  %v860_v19 = vpack.c.bf16 %v58_v12, %v57_v11 }
  0x12   :  { %853 = vmatprep.subr.bf16.mxu0 %v852_v55  ;;  %v90_v15 = vld [vmem:[%s1481_s1 + $0x1e8] sm:$0xff]  ;;  %v41_v17 = vld [vmem:[%s1481_s1 + $0x60] sm:$0xff]  ;;  %v890_v18 = vpack.c.bf16 %v72_v10, %v71_v8  ;;  %v59_v25 = vld [vmem:[%s1481_s1 + $0xf0] sm:$0xff] }
  0x13   :  { %883 = vmatpush3.bf16.msra.mxu1 %v882_v54  ;;  %v42_v20 = vld [vmem:[%s1481_s1 + $0x68] sm:$0xff]  ;;  %v73_v21 = vld [vmem:[%s1481_s1 + $0x160] sm:$0xff]  ;;  %v892_v23 = vpack.c.bf16 %v90_v15, %v89_v14  ;;  %v60_v26 = vld [vmem:[%s1481_s1 + $0xf8] sm:$0xff] }
  0x14   :  { %885 = vmatprep.subr.bf16.mxu1 %v884_v59  ;;  %v27_v22 = vld [vmem:[%s1480_s0] sm:$0xff]  ;;  %v74_v24 = vld [vmem:[%s1481_s1 + $0x168] sm:$0xff]  ;;  %v91_v29 = vld [vmem:[%s1481_s1 + $0x1f0] sm:$0xff]  ;;  %v862_v31 = vpack.c.bf16 %v42_v20, %v41_v17  ;;  %v864_v35 = vpack.c.bf16 %v60_v26, %v59_v25 }
  0x15   :  { %855 = vmatpush3.bf16.msra.mxu0 %v854_v3  ;;  %v173_v27 = vrot.slane %v27_v22, %v1196_v13  ;;  %v166_v28 = vcombine.high %v27_v22, %v27_v22  ;;  %v92_v30 = vld [vmem:[%s1481_s1 + $0x1f8] sm:$0xff]  ;;  %v894_v34 = vpack.c.bf16 %v74_v24, %v73_v21  ;;  %v43_v36 = vld [vmem:[%s1481_s1 + $0x70] sm:$0xff]  ;;  %v109_v41 = vld [vmem:[%s1481_s1 + $0x280] sm:$0xff] }
  0x16   :  { %857 = vmatprep.subr.bf16.mxu0 %v856_v5  ;;  %v44_v37 = vld [vmem:[%s1481_s1 + $0x78] sm:$0xff]  ;;  %v75_v38 = vld [vmem:[%s1481_s1 + $0x170] sm:$0xff]  ;;  %v896_v39 = vpack.c.bf16 %v92_v30, %v91_v29  ;;  %v110_v42 = vld [vmem:[%s1481_s1 + $0x288] sm:$0xff] }
  0x17   :  { %887 = vmatpush3.bf16.msra.mxu1 %v886_v4  ;;  %v181_v32 = vcombine.high %v173_v27, %v173_v27  ;;  %v180_v33 = vrot.slane %v166_v28, %v1196_v13  ;;  %v76_v40 = vld [vmem:[%s1481_s1 + $0x178] sm:$0xff]  ;;  %v141_v44 = vld [vmem:[%s1481_s1 + $0x380] sm:$0xff]  ;;  %v142_v45 = vld [vmem:[%s1481_s1 + $0x388] sm:$0xff]  ;;  %v866_v46 = vpack.c.bf16 %v44_v37, %v43_v36  ;;  %v900_v48 = vpack.c.bf16 %v110_v42, %v109_v41 }
  0x18   :  { %889 = vmatprep.subr.bf16.mxu1 %v888_v9  ;;  %v898_v47 = vpack.c.bf16 %v76_v40, %v75_v38  ;;  %v93_v49 = vld [vmem:[%s1481_s1 + $0x200] sm:$0xff]  ;;  %v94_v50 = vld [vmem:[%s1481_s1 + $0x208] sm:$0xff]  ;;  %v932_v52 = vpack.c.bf16 %v142_v45, %v141_v44  ;;  %v111_v54 = vld [vmem:[%s1481_s1 + $0x290] sm:$0xff] }
  0x19   :  { %859 = vmatpush3.bf16.msra.mxu0 %v858_v16  ;;  %272 = vmatprep.mubr.f32.mxu0 %v181_v32  ;;  %v182_v43 = vcombine.high %v180_v33, %v180_v33  ;;  %v125_v51 = vld [vmem:[%s1481_s1 + $0x300] sm:$0xff]  ;;  %v126_v53 = vld [vmem:[%s1481_s1 + $0x308] sm:$0xff]  ;;  %v112_v55 = vld [vmem:[%s1481_s1 + $0x298] sm:$0xff]  ;;  %v902_v58 = vpack.c.bf16 %v94_v50, %v93_v49 }
  0x1a   :  { %861 = vmatprep.subr.bf16.mxu0 %v860_v19  ;;  %v143_v56 = vld [vmem:[%s1481_s1 + $0x390] sm:$0xff]  ;;  %v144_v57 = vld [vmem:[%s1481_s1 + $0x398] sm:$0xff]  ;;  %v934_v59 = vpack.c.bf16 %v126_v53, %v125_v51  ;;  %v904_v60 = vpack.c.bf16 %v112_v55, %v111_v54  ;;  %v113_v2 = vld [vmem:[%s1481_s1 + $0x2a0] sm:$0xff] }
  0x1b   :  { %891 = vmatpush3.bf16.msra.mxu1 %v890_v18  ;;  %342 = vmatprep.mubr.f32.mxu1 %v182_v43  ;;  %v95_v61 = vld [vmem:[%s1481_s1 + $0x210] sm:$0xff]  ;;  %v96_v62 = vld [vmem:[%s1481_s1 + $0x218] sm:$0xff]  ;;  %v936_v0 = vpack.c.bf16 %v144_v57, %v143_v56  ;;  %v114_v3 = vld [vmem:[%s1481_s1 + $0x2a8] sm:$0xff] }
  0x1c   :  { %893 = vmatprep.subr.bf16.mxu1 %v892_v23  ;;  %v127_v63 = vld [vmem:[%s1481_s1 + $0x310] sm:$0xff]  ;;  %v128_v1 = vld [vmem:[%s1481_s1 + $0x318] sm:$0xff]  ;;  %v145_v4 = vld [vmem:[%s1481_s1 + $0x3a0] sm:$0xff]  ;;  %v906_v6 = vpack.c.bf16 %v96_v62, %v95_v61  ;;  %v908_v8 = vpack.c.bf16 %v114_v3, %v113_v2 }
  0x1d   :  { %863 = vmatpush3.bf16.msra.mxu0 %v862_v31  ;;  %v146_v5 = vld [vmem:[%s1481_s1 + $0x3a8] sm:$0xff]  ;;  %v938_v7 = vpack.c.bf16 %v128_v1, %v127_v63  ;;  %v97_v9 = vld [vmem:[%s1481_s1 + $0x220] sm:$0xff]  ;;  %v115_v15 = vld [vmem:[%s1481_s1 + $0x2b0] sm:$0xff] }
  0x1e   :  { %865 = vmatprep.subr.bf16.mxu0 %v864_v35  ;;  %v98_v10 = vld [vmem:[%s1481_s1 + $0x228] sm:$0xff]  ;;  %v129_v11 = vld [vmem:[%s1481_s1 + $0x320] sm:$0xff]  ;;  %v940_v12 = vpack.c.bf16 %v146_v5, %v145_v4  ;;  %v116_v16 = vld [vmem:[%s1481_s1 + $0x2b8] sm:$0xff] }
  0x1f   :  { %895 = vmatpush3.bf16.msra.mxu1 %v894_v34  ;;  %v130_v14 = vld [vmem:[%s1481_s1 + $0x328] sm:$0xff]  ;;  %v147_v17 = vld [vmem:[%s1481_s1 + $0x3b0] sm:$0xff]  ;;  %v148_v18 = vld [vmem:[%s1481_s1 + $0x3b8] sm:$0xff]  ;;  %v910_v19 = vpack.c.bf16 %v98_v10, %v97_v9  ;;  %v912_v22 = vpack.c.bf16 %v116_v16, %v115_v15 }
  0x20   :  { %897 = vmatprep.subr.bf16.mxu1 %v896_v39  ;;  %v99_v20 = vld [vmem:[%s1481_s1 + $0x230] sm:$0xff]  ;;  %v942_v21 = vpack.c.bf16 %v130_v14, %v129_v11  ;;  %v100_v23 = vld [vmem:[%s1481_s1 + $0x238] sm:$0xff]  ;;  %v944_v26 = vpack.c.bf16 %v148_v18, %v147_v17  ;;  %v118_v28 = vld [vmem:[%s1481_s1 + $0x2c8] sm:$0xff] }
  0x21   :  { %867 = vmatpush3.bf16.msra.mxu0 %v866_v46  ;;  %v131_v24 = vld [vmem:[%s1481_s1 + $0x330] sm:$0xff]  ;;  %v132_v25 = vld [vmem:[%s1481_s1 + $0x338] sm:$0xff]  ;;  %v149_v29 = vld [vmem:[%s1481_s1 + $0x3c0] sm:$0xff] }
  0x22   :  { %901 = vmatprep.subr.bf16.mxu0 %v900_v48  ;;  %v150_v30 = vld [vmem:[%s1481_s1 + $0x3c8] sm:$0xff] }
  0x23   :  { %899 = vmatpush3.bf16.msra.mxu1 %v898_v47  ;;  %v28_v31 = vld [vmem:[%s1480_s0 + $0x8] sm:$0xff] }
  0x24   :  { %933 = vmatprep.subr.bf16.mxu1 %v932_v52  ;;  %273 = vmatmul.mubr.f32.vlgmr.msra.gmra.mrb[0].mxu0 %v173_v27  ;;  %v117_v27 = vld [vmem:[%s1481_s1 + $0x2c0] sm:$0xff] }
  0x25   :  { %903 = vmatpush3.bf16.msra.mxu0 %v902_v58 }
  0x26   :  { %343 = vmatmul.mubr.f32.vlgmr.msra.gmra.mrb[0].mxu1 %v180_v33  ;;  %905 = vmatprep.subr.bf16.mxu0 %v904_v60 }
  0x27   :  { %935 = vmatpush3.bf16.msra.mxu1 %v934_v59 }
  0x28   :  { %937 = vmatprep.subr.bf16.mxu1 %v936_v0 }
  0x29   :  { %907 = vmatpush3.bf16.msra.mxu0 %v906_v6 }
  0x2a   :  { %909 = vmatprep.subr.bf16.mxu0 %v908_v8 }
  0x2b   :  { %939 = vmatpush3.bf16.msra.mxu1 %v938_v7 }
  0x2c   :  { %941 = vmatprep.subr.bf16.mxu1 %v940_v12 }
  0x2d   :  { %12 = vsyncpa [#allocation3], 0  ;;  %911 = vmatpush3.bf16.msra.mxu0 %v910_v19  ;;  %v914_v32 = vpack.c.bf16 %v100_v23, %v99_v20  ;;  %v1357_v33 = vrot.slane %v28_v31, %v1196_v13  ;;  %v183_v34 = vcombine.high %v28_v31, %v28_v31  ;;  %v946_v35 = vpack.c.bf16 %v132_v25, %v131_v24  ;;  %v101_v37 = vld [vmem:[%s1481_s1 + $0x240] sm:$0xff]  ;;  %v102_v38 = vld [vmem:[%s1481_s1 + $0x248] sm:$0xff]  ;;  %s1005_s16 = smov [#allocation2]  }
  0x2e   :  { %913 = vmatprep.subr.bf16.mxu0 %v912_v22  ;;  %v916_v36 = vpack.c.bf16 %v118_v28, %v117_v27  ;;  %v133_v39 = vld [vmem:[%s1481_s1 + $0x340] sm:$0xff]  ;;  %v948_v40 = vpack.c.bf16 %v150_v30, %v149_v29  ;;  %v134_v41 = vld [vmem:[%s1481_s1 + $0x348] sm:$0xff]  ;;  %v119_v42 = vld [vmem:[%s1481_s1 + $0x2d0] sm:$0xff]  ;;  %v918_v48 = vpack.c.bf16 %v102_v38, %v101_v37  ;;  %v1002_v22 = vmov 0.0|0.0   ;;  %s663_s17 = sshll.u32 %s1005_s16, 4  ;;  %s664_s17 = int_to_ptr.vmem [resolvable:$true] %s663_s17 }
  0x2f   :  { %943 = vmatpush3.bf16.msra.mxu1 %v942_v21  ;;  %v120_v43 = vld [vmem:[%s1481_s1 + $0x2d8] sm:$0xff]  ;;  %v198_v44 = vcombine.high %v1357_v33, %v1357_v33  ;;  %v197_v45 = vrot.slane %v183_v34, %v1196_v13  ;;  %v151_v46 = vld [vmem:[%s1481_s1 + $0x3d0] sm:$0xff]  ;;  %v950_v50 = vpack.c.bf16 %v134_v41, %v133_v39  ;;  %v121_v56 = vld [vmem:[%s1481_s1 + $0x2e0] sm:$0xff]  ;;  %vm1003_vm0 = vmmov 0   ;;  %p982_p1 = scmp.lt.s32.totalorder %s664_s17, %s664_s17 }
  0x30   :  { %945 = vmatprep.subr.bf16.mxu1 %v944_v26  ;;  %v152_v47 = vld [vmem:[%s1481_s1 + $0x3d8] sm:$0xff]  ;;  %v920_v51 = vpack.c.bf16 %v120_v43, %v119_v42  ;;  %v103_v13 = vld [vmem:[%s1481_s1 + $0x250] sm:$0xff]  ;;  %v122_v57 = vld [vmem:[%s1481_s1 + $0x2e8] sm:$0xff]  ;;  %v1004_v23 = vmov 0.0   ;;  %vm498_vm1 = vcmask 130048   ;;  %vm655_vm2 = vcmask 74752  }
  0x31   :  { %915 = vmatpush3.bf16.msra.mxu0 %v914_v32  ;;  %412 = vmatprep.mubr.f32.mxu0 %v198_v44  ;;  %v199_v49 = vcombine.high %v197_v45, %v197_v45  ;;  %v104_v52 = vld [vmem:[%s1481_s1 + $0x258] sm:$0xff]  ;;  %v135_v53 = vld [vmem:[%s1481_s1 + $0x350] sm:$0xff]  ;;  %v952_v54 = vpack.c.bf16 %v152_v47, %v151_v46  ;;  %v153_v58 = vld [vmem:[%s1481_s1 + $0x3e0] sm:$0xff]  ;;  %v924_v62 = vpack.c.bf16 %v122_v57, %v121_v56 }
  0x32   :  { %917 = vmatprep.subr.bf16.mxu0 %v916_v36  ;;  %v136_v55 = vld [vmem:[%s1481_s1 + $0x358] sm:$0xff]  ;;  %v154_v59 = vld [vmem:[%s1481_s1 + $0x3e8] sm:$0xff]  ;;  %v922_v60 = vpack.c.bf16 %v104_v52, %v103_v13  ;;  %v105_v63 = vld [vmem:[%s1481_s1 + $0x260] sm:$0xff] }
  0x33   :  { %947 = vmatpush3.bf16.msra.mxu1 %v946_v35  ;;  %482 = vmatprep.mubr.f32.mxu1 %v199_v49  ;;  %v954_v61 = vpack.c.bf16 %v136_v55, %v135_v53  ;;  %v106_v0 = vld [vmem:[%s1481_s1 + $0x268] sm:$0xff]  ;;  %v137_v1 = vld [vmem:[%s1481_s1 + $0x360] sm:$0xff]  ;;  %v956_v2 = vpack.c.bf16 %v154_v59, %v153_v58  ;;  %v123_v4 = vld [vmem:[%s1481_s1 + $0x2f0] sm:$0xff] }
  0x34   :  { %949 = vmatprep.subr.bf16.mxu1 %v948_v40  ;;  %v138_v3 = vld [vmem:[%s1481_s1 + $0x368] sm:$0xff]  ;;  %v124_v5 = vld [vmem:[%s1481_s1 + $0x2f8] sm:$0xff]  ;;  %v155_v6 = vld [vmem:[%s1481_s1 + $0x3f0] sm:$0xff]  ;;  %v926_v8 = vpack.c.bf16 %v106_v0, %v105_v63 }
  0x35   :  { %919 = vmatpush3.bf16.msra.mxu0 %v918_v48  ;;  %v156_v7 = vld [vmem:[%s1481_s1 + $0x3f8] sm:$0xff]  ;;  %v958_v9 = vpack.c.bf16 %v138_v3, %v137_v1  ;;  %v928_v10 = vpack.c.bf16 %v124_v5, %v123_v4  ;;  %v107_v11 = vld [vmem:[%s1481_s1 + $0x270] sm:$0xff]  ;;  %v489_v19 = vld [vmem:[%s1483_s3] sm:$0xff] }
  0x36   :  { %921 = vmatprep.subr.bf16.mxu0 %v920_v51  ;;  %v108_v12 = vld [vmem:[%s1481_s1 + $0x278] sm:$0xff]  ;;  %v960_v14 = vpack.c.bf16 %v156_v7, %v155_v6  ;;  %v139_v15 = vld [vmem:[%s1481_s1 + $0x370] sm:$0xff]  ;;  %v490_v20 = vld [vmem:[%s1483_s3 + $0x8] sm:$0xff] }
  0x37   :  { %951 = vmatpush3.bf16.msra.mxu1 %v950_v50  ;;  %v140_v16 = vld [vmem:[%s1481_s1 + $0x378] sm:$0xff]  ;;  %v930_v17 = vpack.c.bf16 %v108_v12, %v107_v11  ;;  %v965_v21 = vpack.c.bf16 %v490_v20, %v489_v19  ;;  %v671_v25 = vld [vmem:[%s1482_s2] ss:$0 sm:$0xff]  ;;  %v574_v43 = vld [vmem:[%s1485_s5 + $0x8] sm:$0xff] }
  0x38   :  { %953 = vmatprep.subr.bf16.mxu1 %v952_v54  ;;  %v962_v18 = vpack.c.bf16 %v140_v16, %v139_v15  ;;  %v573_v42 = vld [vmem:[%s1485_s5] sm:$0xff]  ;;  %s977_s5 = scalar_lea.vmem %s664_s17, 32 }
  0x39   :  { %923 = vmatpush3.bf16.msra.mxu0 %v922_v60  ;;  %v968_v44 = vpack.c.bf16 %v574_v43, %v573_v42  ;;  %v674_v50 = vld [vmem:[%s1486_s6] ss:$0 sm:$0xff]  ;;  %p978_p0 = scmp.ne.s32.totalorder %s664_s17, %s977_s5  ;;  %p983_p2 = scmp.lt.s32.totalorder %s977_s5, %s977_s5 }
  0x3a   :  { %925 = vmatprep.subr.bf16.mxu0 %v924_v62 }
  0x3b   :  { %955 = vmatpush3.bf16.msra.mxu1 %v954_v61  ;;  %p984_p3 = por %p983_p2, %p982_p1 }
  0x3c   :  { %957 = vmatprep.subr.bf16.mxu1 %v956_v2 }
  0x3d   :  { %927 = vmatpush3.bf16.msra.mxu0 %v926_v8  ;;  %p985_p4 = pnand %p984_p3, %p978_p0 }
  0x3e   :  { %929 = vmatprep.subr.bf16.mxu0 %v928_v10 }
  0x3f   :  { %959 = vmatpush3.bf16.msra.mxu1 %v958_v9 }
  0x40   :  { %961 = vmatprep.subr.bf16.mxu1 %v960_v14 }
  0x41   :  { %931 = vmatpush3.bf16.msra.mxu0 %v930_v17 }
  0x42   :  { %964 = vmatprep.subr.bf16.mxu0 %v1002_v22 }
  0x43   :  { %963 = vmatpush3.bf16.msra.mxu1 %v962_v18 }
  0x44   :  { %413 = vmatmul.mubr.f32.vlgmr.msra.gmra.mrb[2].mxu0 %v1357_v33  ;;  %967 = vmatprep.subr.bf16.mxu1 %v1002_v22 }
  0x45   :  { %966 = vmatpush3.bf16.msra.mxu0 %v965_v21  ;;  %826 = vmatprep.mubr.msk.f32.mxu0 %vm1003_vm0, %v1004_v23 }
  0x46   :  { %483 = vmatmul.mubr.f32.vlgmr.msra.gmra.mrb[2].mxu1 %v197_v45  ;;  %v672_v45 = vld [vmem:[%s1484_s4] ss:$0 sm:$0xff] }
  0x47   :  { %833 = vmatprep.mubr.msk.f32.mxu1 %vm1003_vm0, %v1004_v23  ;;  %969 = vmatpush3.bf16.msra.mxu1 %v968_v44 }
  0xf7   :  { %v708_v24 = vpop.f32.mrb[0].mxu0 }
  0xf8   :  { %v709_v26 = vpop.f32.mrb[1].mxu0 }
  0xf9   :  { %v743_v27 = vpop.f32.mrb[0].mxu1  ;;  %v710_v28 = vadd.f32 %v709_v26, %v708_v24 }
  0xfa   :  { %v744_v29 = vpop.f32.mrb[1].mxu1 }
  0xfb   :  { %v745_v30 = vadd.f32 %v744_v29, %v743_v27  ;;  %v275_v31 = vadd.f32 %v710_v28, %v671_v25 }
  0xfd   :  { %v345_v32 = vadd.f32 %v745_v30, %v275_v31 }
 0x117   :  { %v778_v33 = vpop.f32.mrb[2].mxu0 }
 0x118   :  { %v779_v34 = vpop.f32.mrb[3].mxu0 }
 0x119   :  { %v813_v35 = vpop.f32.mrb[2].mxu1  ;;  %v780_v36 = vadd.f32 %v779_v34, %v778_v33 }
 0x11a   :  { %v814_v37 = vpop.f32.mrb[3].mxu1 }
 0x11b   :  { %v815_v38 = vadd.f32 %v814_v37, %v813_v35  ;;  %v415_v39 = vadd.f32 %v780_v36, %v345_v32 }
 0x11d   :  { %v485_v40 = vadd.f32 %v815_v38, %v415_v39 }
 0x11f   :  { %v488_v41 = vmax.f32 %v485_v40, 0.0 }
 0x121   :  { %827 = vmatmul.mubr.msk.f32.vlgmr.msra.gmra.mrb[4].mxu0 %vm498_vm1, %v488_v41 }
 0x1f4   :  { %v568_v46 = vpop.f32.mrb[4].mxu0 }
 0x1f5   :  { %v569_v47 = vadd.f32 %v672_v45, %v568_v46  ;;  %v828_v48 = vpop.f32.mrb[5].mxu0 }
 0x1f7   :  { %v572_v49 = vmax.f32 %v569_v47, 0.0 }
 0x1f9   :  { %834 = vmatmul.mubr.msk.f32.vlgmr.msra.gmra.mrb[4].mxu1 %vm498_vm1, %v572_v49 }
 0x2cc   :  { %v651_v51 = vpop.f32.mrb[4].mxu1 }
 0x2cd   :  { %v652_v13 = vadd.f32 %v674_v50, %v651_v51  ;;  %v835_v52 = vpop.f32.mrb[5].mxu1 }
 0x2cf   :  { %656 = vst.msk [vmem:[#allocation2] sm:$0x3] %vm655_vm2, %v652_v13 }
 0x2d0   :  { %988 = shalt.err (!%p985_p4)
}
 0x2d1   :  { %s989_s19 = scalar_lea.hbm %s1487_s7, 32 }
 0x2d2   :  { %p990_p5 = scmp.ne.s32.totalorder %s1487_s7, %s989_s19  ;;  %p993_p6 = scmp.lt.u32.totalorder %s989_s19, %s1487_s7 }
 0x2d4   :  { %p995_p7 = pnand %p993_p6, %p990_p5 }
 0x2d6   :  { %998 = shalt.err (!%p995_p7)
}
 0x2d7   :  { %666 = dma.vmem_to_hbm [thread:$0]  %s664_s17, 32, %s1487_s7, [#allocation3]  }
 0x2d8   :  { %999 = dma.done.wait [#allocation3], 32  }
 0x2d9   :  { %1000 = vsyncadd [#allocation3], 4294967264 }
 0x2da   :  { %670 = vsyncpa [#allocation3], 1 }

</bundles_post_ra>
